<compile_context>
chip_gen: v7x
topology: tpu7x:2x2x1
jax: 0.10.0
libtpu: 0.0.40
codegen_flags: <defaults>
</compile_context>

<pallas_src>
import jax
import jax.numpy as jnp
from jax import lax
from jax.experimental import pallas as pl
from jax.experimental.pallas import tpu as pltpu


def _softplus(x):
    # numerically-stable softplus, matches torch.nn.functional.softplus (beta=1)
    return jnp.maximum(x, 0.0) + jnp.log1p(jnp.exp(-jnp.abs(x)))


def actor_kernel(x_ref, w1_ref, b1_ref, w2_ref, b2_ref, wh_ref, bh_ref, out_ref):
    """One batch tile: tanh MLP + fused (sigmoid | softplus) head, packed output."""
    cdt = w1_ref.dtype                                  # compute dtype (f32 or bf16)
    x = x_ref[...].astype(cdt)                          # [TB, S]

    # layer 1: tanh(x @ W1 + b1)
    h1 = jnp.tanh(jnp.dot(x, w1_ref[...],
                          preferred_element_type=jnp.float32) + b1_ref[...])
    # layer 2: tanh(h1 @ W2 + b2)
    h2 = jnp.tanh(jnp.dot(h1.astype(cdt), w2_ref[...],
                          preferred_element_type=jnp.float32) + b2_ref[...])
    # fused head: one matmul producing [TB, 2*action_dim]
    z = jnp.dot(h2.astype(cdt), wh_ref[...],
                preferred_element_type=jnp.float32) + bh_ref[...]

    half = out_ref.shape[-1] // 2                       # action_dim
    # lane-select instead of slice+concat (keeps everything in-vreg, no relayout):
    col = lax.broadcasted_iota(jnp.int32, z.shape, dimension=1)
    out_ref[...] = jnp.where(col < half, jax.nn.sigmoid(z), _softplus(z))


def gaussian_actor_musigma(state, params, *, block_b=1024, compute_dtype=jnp.float32):
    """state: [B, state_dim] f32; params: dict of pre-transposed weights/biases.
    Returns (mu, sigma), each [B, action_dim] f32.

    block_b: batch-tile size for the grid (use smaller, e.g. 512-1024, on v7x's 64 MiB VMEM;
             larger on v5e/v6e). compute_dtype=jnp.bfloat16 halves weight/activation HBM+VMEM
             footprint while keeping f32 accumulation.
    """
    state = state.astype(jnp.float32)
    B, S = state.shape
    action_dim = params["wmu"].shape[1]
    two_a = 2 * action_dim

    # Pack the two heads into one matmul (halves tiny MXU pushes + doubles store lane width).
    w1 = params["w1"].astype(compute_dtype)
    w2 = params["w2"].astype(compute_dtype)
    wh = jnp.concatenate([params["wmu"], params["wsig"]], axis=1).astype(compute_dtype)
    b1 = params["b1"].astype(jnp.float32)
    b2 = params["b2"].astype(jnp.float32)
    bh = jnp.concatenate([params["bmu"], params["bsig"]], axis=1).astype(jnp.float32)

    # Batch tiling: block 2nd-to-last dim must be a multiple of 8 OR equal the full extent.
    if B <= block_b or B <= 8:
        tb, bp = B, B
        x = state
    else:
        tb = max(8, (min(block_b, B) // 8) * 8)
        bp = ((B + tb - 1) // tb) * tb
        x = jnp.pad(state, ((0, bp - B), (0, 0))) if bp != B else state

    def resident(a):  # weights/biases: same block every step -> loaded once, stay in VMEM
        return pl.BlockSpec(a.shape, lambda i: (0,) * a.ndim)

    packed = pl.pallas_call(
        actor_kernel,
        out_shape=jax.ShapeDtypeStruct((bp, two_a), jnp.float32),
        grid=(bp // tb,),
        in_specs=[pl.BlockSpec((tb, S), lambda i: (i, 0)),
                  resident(w1), resident(b1),
                  resident(w2), resident(b2),
                  resident(wh), resident(bh)],
        out_specs=pl.BlockSpec((tb, two_a), lambda i: (i, 0)),
        compiler_params=pltpu.CompilerParams(
            dimension_semantics=("parallel",)),   # megacore split on v7x; harmless on v5e/v6e
    )(x, w1, b1, w2, b2, wh, bh)

    packed = packed[:B]
    return packed[:, :action_dim], packed[:, action_dim:]


def init_params(state_dim, action_dim, net_width, key):
    """Deterministic init matching nn.Linear shapes; weights stored as [in, out]."""
    ks = jax.random.split(key, 8)

    def linear(kw, kb, fan_in, fan_out):
        bound = 1.0 / float(jnp.sqrt(float(fan_in)))
        w = jax.random.uniform(kw, (fan_in, fan_out), jnp.float32, -bound, bound)
        b = jax.random.uniform(kb, (1, fan_out), jnp.float32, -bound, bound)
        return w, b

    w1, b1 = linear(ks[0], ks[1], state_dim, net_width)
    w2, b2 = linear(ks[2], ks[3], net_width, net_width)
    wmu, bmu = linear(ks[4], ks[5], net_width, action_dim)
    wsig, bsig = linear(ks[6], ks[7], net_width, action_dim)
    return dict(w1=w1, b1=b1, w2=w2, b2=b2,
                wmu=wmu, bmu=bmu, wsig=wsig, bsig=bsig)


def reference_forward(state, p):
    a = jnp.tanh(state @ p["w1"] + p["b1"])
    a = jnp.tanh(a @ p["w2"] + p["b2"])
    mu = jax.nn.sigmoid(a @ p["wmu"] + p["bmu"])
    sigma = jax.nn.softplus(a @ p["wsig"] + p["bsig"])
    return mu, sigma


if __name__ == "__main__":
    state_dim, action_dim, net_width = 16, 8, 32

    key = jax.random.PRNGKey(0)
    kp, ks, kb = jax.random.split(key, 3)
    params = init_params(state_dim, action_dim, net_width, kp)

    # --- small-batch exact (f32) check -------------------------------------
    batch = 4
    state = jax.random.normal(ks, (batch, state_dim), dtype=jnp.float32)
    mu, sigma = gaussian_actor_musigma(state, params)
    jax.block_until_ready((mu, sigma))

    mu_ref, sigma_ref = reference_forward(state, params)
    assert mu.shape == (batch, action_dim) and sigma.shape == (batch, action_dim)
    assert jnp.allclose(mu, mu_ref, atol=1e-5), "mu mismatch (f32)"
    assert jnp.allclose(sigma, sigma_ref, atol=1e-5), "sigma mismatch (f32)"
    assert bool(jnp.all(sigma > 0)), "softplus output must be positive"

    # --- larger batch: exercises batch grid (tiling + tail padding) + bf16 --
    big_b = 520                       # not a multiple of the tile -> exercises padding path
    state_big = jax.random.normal(kb, (big_b, state_dim), dtype=jnp.float32)
    mu_b, sig_b = gaussian_actor_musigma(state_big, params,
                                         block_b=128, compute_dtype=jnp.bfloat16)
    jax.block_until_ready((mu_b, sig_b))

    mu_rb, sig_rb = reference_forward(state_big, params)
    assert mu_b.shape == (big_b, action_dim) and sig_b.shape == (big_b, action_dim)
    assert jnp.allclose(mu_b, mu_rb, atol=5e-2, rtol=5e-2), "mu mismatch (bf16 path)"
    assert jnp.allclose(sig_b, sig_rb, atol=5e-2, rtol=5e-2), "sigma mismatch (bf16 path)"
    assert bool(jnp.all(sig_b > 0)), "softplus output must be positive (bf16 path)"

    # TODO(synk): padding net_width / 2*action_dim toward 128 lanes (zero-padded weights) would
    # further densify vregs/stores but was skipped to keep the module's exact parameter shapes.

    print("KERNEL_OK")
</pallas_src>

<mosaic_0001>
module attributes {stable_mosaic.version = 11 : i64} {
  func.func @actor_kernel(%arg0: i32, %arg1: memref<4x16xf32, #tpu.memory_space<vmem>>, %arg2: memref<16x32xf32, #tpu.memory_space<vmem>>, %arg3: memref<1x32xf32, #tpu.memory_space<vmem>>, %arg4: memref<32x32xf32, #tpu.memory_space<vmem>>, %arg5: memref<1x32xf32, #tpu.memory_space<vmem>>, %arg6: memref<32x16xf32, #tpu.memory_space<vmem>>, %arg7: memref<1x16xf32, #tpu.memory_space<vmem>>, %arg8: memref<4x16xf32, #tpu.memory_space<vmem>>) attributes {dimension_semantics = [#tpu.dimension_semantics<parallel>], iteration_bounds = array<i64: 1>, scalar_prefetch = 0 : i64, scratch_operands = 0 : i64, tpu.core_type = #tpu.core_type<tc>, window_params = [{transform_indices = @transform_0, window_bounds = array<i64: 4, 16>}, {pipeline_mode = #tpu.pipeline_mode<synchronous>, transform_indices = @transform_1, window_bounds = array<i64: 16, 32>}, {pipeline_mode = #tpu.pipeline_mode<synchronous>, transform_indices = @transform_2, window_bounds = array<i64: 1, 32>}, {pipeline_mode = #tpu.pipeline_mode<synchronous>, transform_indices = @transform_3, window_bounds = array<i64: 32, 32>}, {pipeline_mode = #tpu.pipeline_mode<synchronous>, transform_indices = @transform_4, window_bounds = array<i64: 1, 32>}, {pipeline_mode = #tpu.pipeline_mode<synchronous>, transform_indices = @transform_5, window_bounds = array<i64: 32, 16>}, {pipeline_mode = #tpu.pipeline_mode<synchronous>, transform_indices = @transform_6, window_bounds = array<i64: 1, 16>}, {transform_indices = @transform_7, window_bounds = array<i64: 4, 16>}]} {
    %c0 = arith.constant 0 : index
    %c0_0 = arith.constant 0 : index
    %0 = vector.load %arg1[%c0, %c0_0] : memref<4x16xf32, #tpu.memory_space<vmem>>, vector<4x16xf32>
    %c0_1 = arith.constant 0 : index
    %c0_2 = arith.constant 0 : index
    %1 = vector.load %arg2[%c0_1, %c0_2] : memref<16x32xf32, #tpu.memory_space<vmem>>, vector<16x32xf32>
    %cst = arith.constant dense<0.000000e+00> : vector<4x32xf32>
    %2 = tpu.matmul %0, %1, %cst {dimension_numbers = #tpu.dot_dimension_numbers<[1], [0], [0], [1], [0, 0, 1, 1], [], []>} : vector<4x16xf32>, vector<16x32xf32>, vector<4x32xf32> -> vector<4x32xf32>
    %c0_3 = arith.constant 0 : index
    %c0_4 = arith.constant 0 : index
    %3 = vector.load %arg3[%c0_3, %c0_4] : memref<1x32xf32, #tpu.memory_space<vmem>>, vector<1x32xf32>
    %4 = vector.broadcast %3 : vector<1x32xf32> to vector<4x32xf32>
    %5 = arith.addf %2, %4 : vector<4x32xf32>
    %6 = math.tanh %5 : vector<4x32xf32>
    %c0_5 = arith.constant 0 : index
    %c0_6 = arith.constant 0 : index
    %7 = vector.load %arg4[%c0_5, %c0_6] : memref<32x32xf32, #tpu.memory_space<vmem>>, vector<32x32xf32>
    %cst_7 = arith.constant dense<0.000000e+00> : vector<4x32xf32>
    %8 = tpu.matmul %6, %7, %cst_7 {dimension_numbers = #tpu.dot_dimension_numbers<[1], [0], [0], [1], [0, 0, 1, 1], [], []>} : vector<4x32xf32>, vector<32x32xf32>, vector<4x32xf32> -> vector<4x32xf32>
    %c0_8 = arith.constant 0 : index
    %c0_9 = arith.constant 0 : index
    %9 = vector.load %arg5[%c0_8, %c0_9] : memref<1x32xf32, #tpu.memory_space<vmem>>, vector<1x32xf32>
    %10 = vector.broadcast %9 : vector<1x32xf32> to vector<4x32xf32>
    %11 = arith.addf %8, %10 : vector<4x32xf32>
    %12 = math.tanh %11 : vector<4x32xf32>
    %c0_10 = arith.constant 0 : index
    %c0_11 = arith.constant 0 : index
    %13 = vector.load %arg6[%c0_10, %c0_11] : memref<32x16xf32, #tpu.memory_space<vmem>>, vector<32x16xf32>
    %cst_12 = arith.constant dense<0.000000e+00> : vector<4x16xf32>
    %14 = tpu.matmul %12, %13, %cst_12 {dimension_numbers = #tpu.dot_dimension_numbers<[1], [0], [0], [1], [0, 0, 1, 1], [], []>} : vector<4x32xf32>, vector<32x16xf32>, vector<4x16xf32> -> vector<4x16xf32>
    %c0_13 = arith.constant 0 : index
    %c0_14 = arith.constant 0 : index
    %15 = vector.load %arg7[%c0_13, %c0_14] : memref<1x16xf32, #tpu.memory_space<vmem>>, vector<1x16xf32>
    %16 = vector.broadcast %15 : vector<1x16xf32> to vector<4x16xf32>
    %17 = arith.addf %14, %16 : vector<4x16xf32>
    %18 = tpu.iota {dimensions = array<i32: 1>} : vector<4x16xi32>
    %c8_i32 = arith.constant 8 : i32
    %19 = vector.broadcast %c8_i32 : i32 to vector<4x16xi32>
    %20 = arith.cmpi slt, %18, %19 : vector<4x16xi32>
    %21 = arith.negf %17 : vector<4x16xf32>
    %22 = math.exp %21 : vector<4x16xf32>
    %cst_15 = arith.constant 1.000000e+00 : f32
    %23 = vector.broadcast %cst_15 : f32 to vector<4x16xf32>
    %24 = arith.addf %23, %22 : vector<4x16xf32>
    %25 = arith.divf %23, %24 : vector<4x16xf32>
    %cst_16 = arith.constant 0.000000e+00 : f32
    %26 = vector.broadcast %cst_16 : f32 to vector<4x16xf32>
    %27 = arith.maximumf %17, %26 : vector<4x16xf32>
    %28 = math.absf %17 : vector<4x16xf32>
    %cst_17 = arith.constant 0.000000e+00 : f32
    %29 = vector.broadcast %cst_17 : f32 to vector<4x16xf32>
    %30 = arith.subf %29, %28 : vector<4x16xf32>
    %31 = math.exp %30 : vector<4x16xf32>
    %32 = math.log1p %31 : vector<4x16xf32>
    %33 = arith.addf %27, %32 : vector<4x16xf32>
    %34 = arith.select %20, %25, %33 : vector<4x16xi1>, vector<4x16xf32>
    %c0_18 = arith.constant 0 : index
    %c0_19 = arith.constant 0 : index
    %35 = vector.load %arg8[%c0_18, %c0_19] : memref<4x16xf32, #tpu.memory_space<vmem>>, vector<4x16xf32>
    tpu.vector_store %arg8[%c0_18, %c0_19], %34 {strides = array<i32>} : memref<4x16xf32, #tpu.memory_space<vmem>>, vector<4x16xf32>,
    return
  }
  func.func @transform_0(%arg0: i32) -> (i32, i32) {
    %c0_i32 = arith.constant 0 : i32
    %c0_i32_0 = arith.constant 0 : i32
    return %arg0, %c0_i32 : i32, i32
  }
  func.func @transform_1(%arg0: i32) -> (i32, i32) {
    %c0_i32 = arith.constant 0 : i32
    %c0_i32_0 = arith.constant 0 : i32
    %c0_i32_1 = arith.constant 0 : i32
    return %c0_i32, %c0_i32_0 : i32, i32
  }
  func.func @transform_2(%arg0: i32) -> (i32, i32) {
    %c0_i32 = arith.constant 0 : i32
    %c0_i32_0 = arith.constant 0 : i32
    %c0_i32_1 = arith.constant 0 : i32
    return %c0_i32, %c0_i32_0 : i32, i32
  }
  func.func @transform_3(%arg0: i32) -> (i32, i32) {
    %c0_i32 = arith.constant 0 : i32
    %c0_i32_0 = arith.constant 0 : i32
    %c0_i32_1 = arith.constant 0 : i32
    return %c0_i32, %c0_i32_0 : i32, i32
  }
  func.func @transform_4(%arg0: i32) -> (i32, i32) {
    %c0_i32 = arith.constant 0 : i32
    %c0_i32_0 = arith.constant 0 : i32
    %c0_i32_1 = arith.constant 0 : i32
    return %c0_i32, %c0_i32_0 : i32, i32
  }
  func.func @transform_5(%arg0: i32) -> (i32, i32) {
    %c0_i32 = arith.constant 0 : i32
    %c0_i32_0 = arith.constant 0 : i32
    %c0_i32_1 = arith.constant 0 : i32
    return %c0_i32, %c0_i32_0 : i32, i32
  }
  func.func @transform_6(%arg0: i32) -> (i32, i32) {
    %c0_i32 = arith.constant 0 : i32
    %c0_i32_0 = arith.constant 0 : i32
    %c0_i32_1 = arith.constant 0 : i32
    return %c0_i32, %c0_i32_0 : i32, i32
  }
  func.func @transform_7(%arg0: i32) -> (i32, i32) {
    %c0_i32 = arith.constant 0 : i32
    %c0_i32_0 = arith.constant 0 : i32
    return %arg0, %c0_i32 : i32, i32
  }
}

</mosaic_0001>

<bundles_post_ra>
// kernel: tpu_custom_call.1
= control target key start
LH: loop header
LB: loop body
LE: loop exit
PB: predicated region body
PF: predicated region fallthrough
CT: control target
= control target key end

     0   :  { %12 = vsyncpa [#allocation3], 0  ;;  %s575_s0 = inlined_call_operand.hbm [shape: f32[4,16], index: 0, kind: input, shape index: {}]   ;;  %s576_s1 = inlined_call_operand.vmem [shape: f32[16,32], index: 1, kind: input, shape index: {}]   ;;  %s577_s2 = inlined_call_operand.vmem [shape: f32[1,32], index: 2, kind: input, shape index: {}]   ;;  %s578_s3 = inlined_call_operand.vmem [shape: f32[32,32], index: 3, kind: input, shape index: {}]   ;;  %s579_s4 = inlined_call_operand.vmem [shape: f32[1,32], index: 4, kind: input, shape index: {}]   ;;  %s580_s5 = inlined_call_operand.vmem [shape: f32[32,16], index: 5, kind: input, shape index: {}]   ;;  %s581_s6 = inlined_call_operand.vmem [shape: f32[1,16], index: 6, kind: input, shape index: {}]   ;;  %s582_s7 = inlined_call_operand.hbm [shape: f32[4,16], index: 7, kind: output, shape index: {}]  }
   0x1   :  { %13 = vsyncpa [#allocation4], 0  ;;  %s465_s24 = smov [#allocation2]   ;;  %s417_s28 = scalar_lea.hbm %s575_s0, 64 }
   0x2   :  { %s20_s25 = sshll.u32 %s465_s24, 4  ;;  %p418_p0 = scmp.ne.s32.totalorder %s575_s0, %s417_s28  ;;  %s21_s25 = int_to_ptr.vmem [resolvable:$true] %s20_s25 }
   0x3   :  { %p421_p1 = scmp.lt.u32.totalorder %s417_s28, %s575_s0 }
   0x5   :  { %p423_p2 = pnand %p421_p1, %p418_p0 }
   0x7   :  { %426 = shalt.err (!%p423_p2)
}
   0x8   :  { %s427_s10 = scalar_lea.vmem %s21_s25, 64  ;;  %p432_p4 = scmp.lt.s32.totalorder %s21_s25, %s21_s25 }
   0x9   :  { %p428_p3 = scmp.ne.s32.totalorder %s21_s25, %s427_s10  ;;  %p433_p5 = scmp.lt.s32.totalorder %s427_s10, %s427_s10 }
   0xb   :  { %p434_p6 = por %p433_p5, %p432_p4 }
   0xd   :  { %p435_p7 = pnand %p434_p6, %p428_p3 }
   0xf   :  { %438 = shalt.err (!%p435_p7)
}
  0x10   :  { %23 = dma.hbm_to_vmem [thread:$0]  %s575_s0, 64, %s21_s25, [#allocation3]  }
  0x11   :  { %461 = dma.done.wait [#allocation3], 64  }
  0x12   :  { %462 = vsyncadd [#allocation3], 4294967232  ;;  %v466_v0 = vmov 0.0|0.0   ;;  %vm467_vm0 = vmmov 0   ;;  %v468_v1 = vmov 0.0   ;;  %v40_v2 = vld [vmem:[%s576_s1] sm:$0xff]  ;;  %v294_v41 = vlaneseq }
  0x13   :  { %385 = vmatprep.subr.bf16.mxu0 %v466_v0  ;;  %360 = vmatprep.mubr.msk.f32.mxu0 %vm467_vm0, %v468_v1  ;;  %v41_v3 = vld [vmem:[%s576_s1 + $0x8] sm:$0xff]  ;;  %v39_v5 = vld [vmem:[#allocation2] sm:$0xf]  ;;  %vm49_vm1 = vcmask 130048   ;;  %v126_v8 = vld [vmem:[%s578_s3 + $0x10] sm:$0xff]  ;;  %vm135_vm2 = vcmask 261120  }
  0x14   :  { %388 = vmatprep.subr.bf16.mxu1 %v466_v0  ;;  %371 = vmatprep.mubr.msk.f32.mxu1 %vm467_vm0, %v468_v1  ;;  %v386_v4 = vpack.c.bf16 %v41_v3, %v40_v2  ;;  %v124_v6 = vld [vmem:[%s578_s3] sm:$0xff]  ;;  %v125_v7 = vld [vmem:[%s578_s3 + $0x8] sm:$0xff]  ;;  %v127_v10 = vld [vmem:[%s578_s3 + $0x18] sm:$0xff]  ;;  %v295_v44 = vand.u32 127, %v294_v41  ;;  %vm319_vm5 = vcmask 125952  }
  0x15   :  { %v389_v9 = vpack.c.bf16 %v125_v7, %v124_v6  ;;  %v392_v11 = vpack.c.bf16 %v127_v10, %v126_v8  ;;  %v336_v12 = vld [vmem:[%s577_s2] ss:$0 sm:$0xff]  ;;  %v211_v18 = vld [vmem:[%s580_s5 + $0x8] sm:$0xff]  ;;  %v212_v19 = vld [vmem:[%s580_s5 + $0x10] sm:$0xff] }
  0x16   :  { %387 = vmatpush3.bf16.msra.mxu0 %v386_v4  ;;  %v210_v17 = vld [vmem:[%s580_s5] sm:$0xff]  ;;  %v213_v21 = vld [vmem:[%s580_s5 + $0x18] sm:$0xff]  ;;  %vm296_vm4 = vcmp.lt.s32.totalorder %v295_v44, 8 }
  0x17   :  { %394 = vmatprep.subr.bf16.mxu0 %v466_v0  ;;  %390 = vmatpush3.bf16.msra.mxu1 %v389_v9  ;;  %v395_v20 = vpack.c.bf16 %v211_v18, %v210_v17  ;;  %v398_v22 = vpack.c.bf16 %v213_v21, %v212_v19  ;;  %v338_v23 = vld [vmem:[%s579_s4] ss:$0 sm:$0xff]  ;;  %s469_s4 = smov [#allocation5]  }
  0x18   :  { %391 = vmatprep.subr.bf16.mxu1 %v466_v0  ;;  %v340_v28 = vld [vmem:[%s581_s6] ss:$0 sm:$0xff]  ;;  %s327_s5 = sshll.u32 %s469_s4, 4  ;;  %s328_s5 = int_to_ptr.vmem [resolvable:$true] %s327_s5 }
  0x19   :  { %361 = vmatmul.mubr.msk.f32.vlgmr.msra.gmra.mrb[0].mxu0 %vm49_vm1, %v39_v5  ;;  %s439_s6 = scalar_lea.vmem %s328_s5, 64  ;;  %p444_p9 = scmp.lt.s32.totalorder %s328_s5, %s328_s5 }
  0x1a   :  { %382 = vmatprep.mubr.msk.f32.mxu0 %vm467_vm0, %v468_v1  ;;  %396 = vmatpush3.bf16.msra.mxu0 %v395_v20  ;;  %p440_p8 = scmp.ne.s32.totalorder %s328_s5, %s439_s6  ;;  %p445_p10 = scmp.lt.s32.totalorder %s439_s6, %s439_s6 }
  0x1b   :  { %393 = vmatpush3.bf16.msra.mxu1 %v392_v11  ;;  %397 = vmatprep.subr.bf16.mxu0 %v466_v0 }
  0x1c   :  { %p446_p11 = por %p445_p10, %p444_p9 }
  0x1e   :  { %399 = vmatpush3.bf16.msra.mxu0 %v398_v22  ;;  %p447_p12 = pnand %p446_p11, %p440_p8 }
  0xec   :  { %v119_v13 = vpop.f32.mrb[0].mxu0 }
  0xed   :  { %v120_v14 = vadd.f32 %v336_v12, %v119_v13  ;;  %v362_v15 = vpop.f32.mrb[1].mxu0 }
  0xef   :  { %405 = vtanh.f32 %v120_v14 }
  0xf9   :  { %v406_v16 = vpop.eup %405 }
  0xfa   :  { %372 = vmatmul.mubr.msk.f32.vlgmr.msra.gmra.mrb[0].mxu1 %vm135_vm2, %v406_v16 }
 0x1cd   :  { %v205_v24 = vpop.f32.mrb[0].mxu1 }
 0x1ce   :  { %v206_v25 = vadd.f32 %v338_v23, %v205_v24  ;;  %v373_v26 = vpop.f32.mrb[1].mxu1 }
 0x1d0   :  { %407 = vtanh.f32 %v206_v25 }
 0x1da   :  { %v408_v27 = vpop.eup %407 }
 0x1db   :  { %383 = vmatmul.mubr.msk.f32.vlgmr.msra.gmra.mrb[2].mxu0 %vm135_vm2, %v408_v27 }
 0x2ae   :  { %v290_v29 = vpop.f32.mrb[2].mxu0 }
 0x2af   :  { %v291_v30 = vadd.f32 %v340_v28, %v290_v29  ;;  %v384_v31 = vpop.f32.mrb[3].mxu0 }
 0x2b1   :  { %v304_v32 = vand.u32 2147483647, %v291_v30  ;;  %v342_v34 = vmul.f32 -1.442695, %v291_v30  ;;  %v303_v48 = vmax.f32 %v291_v30, 0.0 }
 0x2b3   :  { %v305_v33 = vsub.f32 0.0, %v304_v32 }
 0x2b5   :  { %v306_v35 = vmul.f32 1.442695, %v305_v33 }
 0x2b7   :  { %409 = vpow2.f32 %v306_v35 }
 0x2b8   :  { %411 = vpow2.f32 %v342_v34 }
 0x2c1   :  { %v410_v36 = vpop.eup %409 }
 0x2c2   :  { %v412_v37 = vpop.eup %411  ;;  %v308_v38 = vadd.f32 1.0, %v410_v36  ;;  %v311_v40 = vmul.f32 -0.5, %v410_v36  ;;  %v314_v43 = vand.u32 2147483647, %v410_v36 }
 0x2c3   :  { %v300_v39 = vadd.f32 1.0, %v412_v37 }
 0x2c4   :  { %413 = vlog2.f32 %v308_v38  ;;  %v312_v42 = vadd.f32 1.0, %v311_v40  ;;  %vm315_vm3 = vcmp.lt.f32.partialorder %v314_v43, 0.0004427343 }
 0x2c5   :  { %415 = vrcp.f32 %v300_v39 }
 0x2c6   :  { %v313_v47 = vmul.f32 %v410_v36, %v312_v42 }
 0x2ce   :  { %v414_v45 = vpop.eup %413 }
 0x2cf   :  { %v310_v46 = vmul.f32 0.6931472, %v414_v45  ;;  %v416_v51 = vpop.eup %415 }
 0x2d1   :  { %v316_v49 = vsel %vm315_vm3, %v313_v47, %v310_v46 }
 0x2d2   :  { %v317_v50 = vadd.f32 %v316_v49, %v303_v48 }
 0x2d4   :  { %v318_v52 = vsel %vm296_vm4, %v416_v51, %v317_v50 }
 0x2d5   :  { %320 = vst.msk [vmem:[#allocation5] sm:$0xf] %vm319_vm5, %v318_v52 }
 0x2d6   :  { %450 = shalt.err (!%p447_p12)
}
 0x2d7   :  { %s451_s14 = scalar_lea.hbm %s582_s7, 64 }
 0x2d8   :  { %p452_p13 = scmp.ne.s32.totalorder %s582_s7, %s451_s14  ;;  %p455_p0 = scmp.lt.u32.totalorder %s451_s14, %s582_s7 }
 0x2da   :  { %p457_p1 = pnand %p455_p0, %p452_p13 }
 0x2dc   :  { %460 = shalt.err (!%p457_p1)
}
 0x2dd   :  { %330 = dma.vmem_to_hbm [thread:$0]  %s328_s5, 64, %s582_s7, [#allocation4]  }
 0x2de   :  { %463 = dma.done.wait [#allocation4], 64  }
 0x2df   :  { %464 = vsyncadd [#allocation4], 4294967232 }
 0x2e0   :  { %334 = vsyncpa [#allocation3], 1 }
 0x2e1   :  { %335 = vsyncpa [#allocation4], 1 }

</bundles_post_ra>
